<compile_context>
chip_gen: v5e
topology: v5e:2x2
jax: 0.10.0
libtpu: 0.0.40
codegen_flags: <defaults>
</compile_context>

<pallas_src>
import functools
import math

import jax
import jax.numpy as jnp
from jax import lax
from jax.experimental import pallas as pl
from jax.experimental.pallas import tpu as pltpu


# --------------------------------------------------------------------------- #
# Kernel                                                                      #
# --------------------------------------------------------------------------- #
def _make_loss_kernel(alpha, gamma, hard_targets, need_mask, rows_total,
                      block_rows):
    alpha = float(alpha)
    gamma = float(gamma)

    def kernel(x_ref, y_ref, w_ref, out_ref):
        x = x_ref[...]
        y = y_ref[...]
        w = w_ref[...]
        # bf16 (etc.) passthrough: upcast in-register only; HBM traffic stays
        # at the input dtype's width.
        if x.dtype != jnp.float32:
            x = x.astype(jnp.float32)
        if y.dtype != jnp.float32:
            y = y.astype(jnp.float32)
        if w.dtype != jnp.float32:
            w = w.astype(jnp.float32)

        if need_mask:
            # Global row index mask for the (possibly OOB-padded) tail block.
            row = lax.broadcasted_iota(jnp.int32, x.shape, 0)
            row = row + pl.program_id(0) * block_rows
            valid = row < rows_total
            # Zero the inputs first so garbage (possibly NaN/Inf) OOB data can
            # never poison the transcendentals / products below.
            x = jnp.where(valid, x, 0.0)
            y = jnp.where(valid, y, 0.0)
            w = jnp.where(valid, w, 0.0)

        # Numerically stable BCE-with-logits (same as torch's):
        #   bce = relu(x) - x*y + log1p(exp(-|x|))
        e = jnp.exp(-jnp.abs(x))            # EUP exp (shared below)
        sp = jnp.log1p(e)                   # EUP log1p
        bce = jnp.maximum(x, 0.0) - x * y + sp
        if need_mask:
            bce = jnp.where(valid, bce, 0.0)   # zero padded contributions

        if hard_targets:
            # pt = exp(-bce) = exp(x*y - relu(x)) / (1 + e).  For y in {0, 1}
            # the numerator collapses to a select between 1 and e, removing the
            # second full exp (EUP is the tight slot on v7x); the denominator
            # goes through the cheap approximate reciprocal.
            # TODO(synk): with soft targets in (0,1) pass hard_targets=False.
            mismatch = jnp.logical_xor(x >= 0.0, y >= 0.5)
            num = jnp.where(mismatch, e, 1.0)
            pt = num * pl.reciprocal(1.0 + e, approx=True)
        else:
            pt = jnp.exp(-bce)              # exact path for soft targets

        one_minus_pt = 1.0 - pt
        if gamma == 0.0:
            mod = jnp.ones_like(one_minus_pt)
        elif gamma == float(int(gamma)) and 1.0 <= gamma <= 4.0:
            # Small-integer gamma (default gamma=2): repeated multiplies, no
            # float-exponent pow (saves an exp/log EUP pair).
            mod = one_minus_pt
            for _ in range(int(gamma) - 1):
                mod = mod * one_minus_pt
        else:
            # Clamp: tiny negative (1-pt) from rounding would NaN under **gamma.
            mod = jnp.maximum(one_minus_pt, 0.0) ** gamma

        focal = alpha * mod * bce
        wbce = bce * w

        # Lane-dense per-tile partials: one sublane (row) reduce per loss, one
        # merged unmasked store per step.  Final tiny reduction happens in JAX.
        # TODO(synk): the row reductions could be offloaded to the idle MXU
        # (ones @ tile) if the VALU slot ever becomes co-critical on v7x.
        fsum = jnp.sum(focal, axis=0, keepdims=True)
        bsum = jnp.sum(bce, axis=0, keepdims=True)
        wsum = jnp.sum(wbce, axis=0, keepdims=True)
        out_ref[...] = jnp.concatenate([fsum, bsum, wsum], axis=0)[None]

    return kernel


# --------------------------------------------------------------------------- #
# Tiling heuristics                                                           #
# --------------------------------------------------------------------------- #
def _vmem_budget():
    """Generation-aware VMEM budgets (v7x: 64 MiB/TC, v5e/v6e: 128 MiB)."""
    try:
        cap = int(pltpu.get_tpu_info().vmem_capacity_bytes)
    except Exception:
        cap = 64 << 20  # conservative (v7x-sized) default
    vmem_limit = min((cap * 3) // 4, 96 << 20)   # 48 MiB on v7x, 96 MiB on v5e/v6e
    buf_budget = (vmem_limit * 3) // 4           # for 3 inputs x 2 pipeline bufs
    return buf_budget, vmem_limit


def _pick_lanes(total, last_dim):
    """Largest lane-dense width (multiple of 128) that exactly divides the
    element count; otherwise fall back to the natural last dim."""
    for cand in (2048, 1024, 512, 256, 128):
        if total % cand == 0:
            return cand
    return last_dim


def _choose_block_rows(rows, lanes, sum_itemsize, align, buf_budget):
    if rows <= align:
        return rows  # single block equal to the full dim (legal BlockSpec)
    # 3 inputs x 2 pipeline buffers must fit the VMEM budget.
    cap_vmem = max(align, buf_budget // (2 * lanes * sum_itemsize))
    # Target ~12-24 MiB of HBM traffic per grid step (amortizes ~0.35us/step).
    cap_traffic = max(align, (24 << 20) // (lanes * sum_itemsize))
    blk = min(cap_vmem, cap_traffic, rows)
    blk = max(align, (blk // align) * align)
    # Keep >= 2 grid steps so the "parallel" axis can split across v7x's 2 TCs.
    half = -(-rows // 2)
    half = -(-half // align) * align
    return max(align, min(blk, half))


# --------------------------------------------------------------------------- #
# pallas_call wrapper                                                         #
# --------------------------------------------------------------------------- #
def _loss_sums(output, target, weights, alpha, gamma, hard_targets,
               block_rows=None):
    total = int(math.prod(output.shape))
    last = int(output.shape[-1]) if output.ndim >= 1 else total
    lanes = _pick_lanes(total, last)
    rows = total // lanes

    # Free, metadata-only reshapes of contiguous row-major arrays (safe because
    # the only downstream use is a global sum over all elements).
    x2 = output.reshape(rows, lanes)
    y2 = target.reshape(rows, lanes)
    w2 = weights.reshape(rows, lanes)

    sum_isz = (output.dtype.itemsize + target.dtype.itemsize
               + weights.dtype.itemsize)
    all_f32 = (output.dtype.itemsize == 4 and target.dtype.itemsize == 4
               and weights.dtype.itemsize == 4)
    align = 8 if all_f32 else 16   # sub-32-bit dtypes pack 16 rows per sublane

    buf_budget, vmem_limit = _vmem_budget()
    if block_rows is None:
        block_rows = _choose_block_rows(rows, lanes, sum_isz, align, buf_budget)
    else:
        block_rows = int(block_rows)
        if block_rows >= rows:
            block_rows = rows
        else:
            block_rows = min(rows, max(align, (-(-block_rows // align)) * align))

    grid_n = -(-rows // block_rows)
    need_mask = (rows % block_rows) != 0

    kernel = _make_loss_kernel(alpha, gamma, hard_targets, need_mask, rows,
                               block_rows)
    tile_spec = pl.BlockSpec((block_rows, lanes), lambda i: (i, 0))
    out_spec = pl.BlockSpec((1, 3, lanes), lambda i: (i, 0, 0))

    partials = pl.pallas_call(
        kernel,
        out_shape=jax.ShapeDtypeStruct((grid_n, 3, lanes), jnp.float32),
        grid_spec=pltpu.PrefetchScalarGridSpec(
            num_scalar_prefetch=0,
            grid=(grid_n,),
            in_specs=[tile_spec, tile_spec, tile_spec],
            out_specs=out_spec,
        ),
        compiler_params=pltpu.CompilerParams(
            dimension_semantics=("parallel",),
            vmem_limit_bytes=vmem_limit),
    )(x2, y2, w2)

    sums = jnp.sum(partials, axis=(0, 2))   # tiny final reduction in JAX
    return sums[0], sums[1], sums[2]


@functools.partial(
    jax.jit,
    static_argnames=("alpha", "gamma", "focal_weight", "bce_weight",
                     "wbce_weight", "adaptively_rescale_losses",
                     "hard_targets", "block_rows"))
def focal_bce_wbce_loss(output, target, weights,
                        alpha=0.25, gamma=2.0,
                        focal_weight=1.0, bce_weight=1.0, wbce_weight=1.0,
                        adaptively_rescale_losses=True, hard_targets=True,
                        block_rows=None):
    n_elems = float(math.prod(output.shape))

    focal_sum, bce_sum, wbce_sum = _loss_sums(
        output, target, weights, alpha, gamma, hard_targets, block_rows)
    loss1 = focal_sum / n_elems   # FocalLoss (mean)
    loss2 = bce_sum / n_elems     # BCEWithLogitsLoss (mean)
    loss3 = wbce_sum / n_elems    # WeightedBCELoss (mean of bce * weights)

    tot_w = focal_weight + bce_weight + wbce_weight
    fw = focal_weight / tot_w
    bw = bce_weight / tot_w
    ww = wbce_weight / tot_w

    if adaptively_rescale_losses:
        # Matches PyTorch's .detach().item(): weights carry no gradient.
        l1d = lax.stop_gradient(loss1)
        l2d = lax.stop_gradient(loss2)
        l3d = lax.stop_gradient(loss3)
        tot = l1d + l2d + l3d
        w1 = tot / (l1d + 1e-6) * fw
        w2 = tot / (l2d + 1e-6) * bw
        w3 = tot / (l3d + 1e-6) * ww
    else:
        w1, w2, w3 = fw, bw, ww

    return w1 * loss1 + w2 * loss2 + w3 * loss3


# --------------------------------------------------------------------------- #
# Pure-JAX reference                                                          #
# --------------------------------------------------------------------------- #
def _reference(output, target, weights, alpha=0.25, gamma=2.0,
               focal_weight=1.0, bce_weight=1.0, wbce_weight=1.0,
               adaptively_rescale_losses=True):
    x = output.astype(jnp.float32)
    y = target.astype(jnp.float32)
    w = weights.astype(jnp.float32)
    bce = jnp.maximum(x, 0.0) - x * y + jnp.log1p(jnp.exp(-jnp.abs(x)))
    pt = jnp.exp(-bce)
    loss1 = jnp.mean(alpha * (1.0 - pt) ** gamma * bce)
    loss2 = jnp.mean(bce)
    loss3 = jnp.mean(bce * w)
    tot_w = focal_weight + bce_weight + wbce_weight
    fw, bw, ww = focal_weight / tot_w, bce_weight / tot_w, wbce_weight / tot_w
    if adaptively_rescale_losses:
        tot = loss1 + loss2 + loss3
        w1 = tot / (loss1 + 1e-6) * fw
        w2 = tot / (loss2 + 1e-6) * bw
        w3 = tot / (loss3 + 1e-6) * ww
    else:
        w1, w2, w3 = fw, bw, ww
    return w1 * loss1 + w2 * loss2 + w3 * loss3


if __name__ == "__main__":
    key = jax.random.PRNGKey(0)
    k1, k2, k3, k4 = jax.random.split(key, 4)

    # (batch, num_labels) multi-label classification logits, medvqa-style.
    B, C = 64, 112
    output = jax.random.normal(k1, (B, C), dtype=jnp.float32)
    target = (jax.random.uniform(k2, (B, C)) > 0.5).astype(jnp.float32)
    weights = jax.random.uniform(k3, (B, C), dtype=jnp.float32) * 2.0

    # 1) Default path (lane-dense flattening, single block).
    ref = _reference(output, target, weights)
    loss = jax.block_until_ready(focal_bce_wbce_loss(output, target, weights))
    assert jnp.allclose(loss, ref, rtol=5e-3, atol=1e-5), (loss, ref)

    # 2) Multi-block "parallel" grid + tail-row masking (rows not divisible).
    B2, C2 = 160, 112   # 17920 elems -> (35, 512) lane-dense layout
    out2 = jax.random.normal(k1, (B2, C2), dtype=jnp.float32)
    tgt2 = (jax.random.uniform(k2, (B2, C2)) > 0.5).astype(jnp.float32)
    wts2 = jax.random.uniform(k3, (B2, C2), dtype=jnp.float32) * 2.0
    ref2 = _reference(out2, tgt2, wts2)
    loss2 = jax.block_until_ready(focal_bce_wbce_loss(out2, tgt2, wts2))
    assert jnp.allclose(loss2, ref2, rtol=5e-3, atol=1e-5), (loss2, ref2)
    loss2b = jax.block_until_ready(
        focal_bce_wbce_loss(out2, tgt2, wts2, block_rows=8))
    assert jnp.allclose(loss2b, ref2, rtol=5e-3, atol=1e-5), (loss2b, ref2)

    # 3) Fallback layout (element count not a multiple of 128) + soft targets
    #    via the exact (hard_targets=False) path and non-adaptive weighting.
    B3, C3 = 30, 37
    out3 = jax.random.normal(k1, (B3, C3), dtype=jnp.float32)
    tgt3 = jax.random.uniform(k2, (B3, C3), dtype=jnp.float32)       # soft
    wts3 = jax.random.uniform(k3, (B3, C3), dtype=jnp.float32) * 2.0
    ref3 = _reference(out3, tgt3, wts3, adaptively_rescale_losses=False)
    loss3 = jax.block_until_ready(
        focal_bce_wbce_loss(out3, tgt3, wts3, adaptively_rescale_losses=False,
                            hard_targets=False))
    assert jnp.allclose(loss3, ref3, rtol=1e-5, atol=1e-6), (loss3, ref3)

    # 4) bf16 passthrough (no wrapper pre-cast; kernel upcasts in-register).
    out4 = jax.random.normal(k4, (64, 128), dtype=jnp.bfloat16)
    tgt4 = (jax.random.uniform(k2, (64, 128)) > 0.5).astype(jnp.bfloat16)
    wts4 = (jax.random.uniform(k3, (64, 128)) * 2.0).astype(jnp.bfloat16)
    ref4 = _reference(out4, tgt4, wts4)
    loss4 = jax.block_until_ready(focal_bce_wbce_loss(out4, tgt4, wts4))
    assert jnp.allclose(loss4, ref4, rtol=5e-3, atol=1e-5), (loss4, ref4)

    print("KERNEL_OK")
</pallas_src>

<mosaic_0001>
module attributes {stable_mosaic.version = 11 : i64} {
  func.func @kernel(%arg0: i32, %arg1: memref<7x1024xf32, #tpu.memory_space<vmem>>, %arg2: memref<7x1024xf32, #tpu.memory_space<vmem>>, %arg3: memref<7x1024xf32, #tpu.memory_space<vmem>>, %arg4: memref<1x3x1024xf32, #tpu.memory_space<vmem>>) attributes {dimension_semantics = [#tpu.dimension_semantics<parallel>], iteration_bounds = array<i64: 1>, scalar_prefetch = 0 : i64, scratch_operands = 0 : i64, tpu.core_type = #tpu.core_type<tc>, window_params = [{transform_indices = @transform_0, window_bounds = array<i64: 7, 1024>}, {transform_indices = @transform_1, window_bounds = array<i64: 7, 1024>}, {transform_indices = @transform_2, window_bounds = array<i64: 7, 1024>}, {transform_indices = @transform_3, window_bounds = array<i64: 1, 3, 1024>}]} {
    %c0 = arith.constant 0 : index
    %c0_0 = arith.constant 0 : index
    %0 = vector.load %arg1[%c0, %c0_0] : memref<7x1024xf32, #tpu.memory_space<vmem>>, vector<7x1024xf32>
    %c0_1 = arith.constant 0 : index
    %c0_2 = arith.constant 0 : index
    %1 = vector.load %arg2[%c0_1, %c0_2] : memref<7x1024xf32, #tpu.memory_space<vmem>>, vector<7x1024xf32>
    %c0_3 = arith.constant 0 : index
    %c0_4 = arith.constant 0 : index
    %2 = vector.load %arg3[%c0_3, %c0_4] : memref<7x1024xf32, #tpu.memory_space<vmem>>, vector<7x1024xf32>
    %3 = math.absf %0 : vector<7x1024xf32>
    %cst = arith.constant 0.000000e+00 : f32
    %4 = vector.broadcast %cst : f32 to vector<7x1024xf32>
    %5 = arith.subf %4, %3 : vector<7x1024xf32>
    %6 = math.exp %5 : vector<7x1024xf32>
    %7 = math.log1p %6 : vector<7x1024xf32>
    %cst_5 = arith.constant 0.000000e+00 : f32
    %8 = vector.broadcast %cst_5 : f32 to vector<7x1024xf32>
    %9 = arith.maximumf %0, %8 : vector<7x1024xf32>
    %10 = arith.mulf %0, %1 : vector<7x1024xf32>
    %11 = arith.subf %9, %10 : vector<7x1024xf32>
    %12 = arith.addf %11, %7 : vector<7x1024xf32>
    %cst_6 = arith.constant 0.000000e+00 : f32
    %13 = vector.broadcast %cst_6 : f32 to vector<7x1024xf32>
    %14 = arith.cmpf oge, %0, %13 : vector<7x1024xf32>
    %cst_7 = arith.constant 5.000000e-01 : f32
    %15 = vector.broadcast %cst_7 : f32 to vector<7x1024xf32>
    %16 = arith.cmpf oge, %1, %15 : vector<7x1024xf32>
    %17 = arith.xori %14, %16 : vector<7x1024xi1>
    %cst_8 = arith.constant 1.000000e+00 : f32
    %18 = vector.broadcast %cst_8 : f32 to vector<7x1024xf32>
    %19 = arith.select %17, %6, %18 : vector<7x1024xi1>, vector<7x1024xf32>
    %cst_9 = arith.constant 1.000000e+00 : f32
    %20 = vector.broadcast %cst_9 : f32 to vector<7x1024xf32>
    %21 = arith.addf %20, %6 : vector<7x1024xf32>
    %22 = tpu.reciprocal %21 {approx = true} : vector<7x1024xf32> -> vector<7x1024xf32>
    %23 = arith.mulf %19, %22 : vector<7x1024xf32>
    %cst_10 = arith.constant 1.000000e+00 : f32
    %24 = vector.broadcast %cst_10 : f32 to vector<7x1024xf32>
    %25 = arith.subf %24, %23 : vector<7x1024xf32>
    %26 = arith.mulf %25, %25 : vector<7x1024xf32>
    %cst_11 = arith.constant 2.500000e-01 : f32
    %27 = vector.broadcast %cst_11 : f32 to vector<7x1024xf32>
    %28 = arith.mulf %27, %26 : vector<7x1024xf32>
    %29 = arith.mulf %28, %12 : vector<7x1024xf32>
    %30 = arith.mulf %12, %2 : vector<7x1024xf32>
    %cst_12 = arith.constant dense<0.000000e+00> : vector<1024xf32>
    %31 = vector.multi_reduction <add>, %29, %cst_12 [0] : vector<7x1024xf32> to vector<1024xf32>
    %32 = vector.shape_cast %31 : vector<1024xf32> to vector<1x1024xf32>
    %cst_13 = arith.constant dense<0.000000e+00> : vector<1024xf32>
    %33 = vector.multi_reduction <add>, %12, %cst_13 [0] : vector<7x1024xf32> to vector<1024xf32>
    %34 = vector.shape_cast %33 : vector<1024xf32> to vector<1x1024xf32>
    %cst_14 = arith.constant dense<0.000000e+00> : vector<1024xf32>
    %35 = vector.multi_reduction <add>, %30, %cst_14 [0] : vector<7x1024xf32> to vector<1024xf32>
    %36 = vector.shape_cast %35 : vector<1024xf32> to vector<1x1024xf32>
    %37 = tpu.concatenate %32, %34, %36 in 0 : vector<1x1024xf32>, vector<1x1024xf32>, vector<1x1024xf32> -> vector<3x1024xf32>
    %38 = vector.shape_cast %37 : vector<3x1024xf32> to vector<1x3x1024xf32>
    %c0_15 = arith.constant 0 : index
    %c0_16 = arith.constant 0 : index
    %c0_17 = arith.constant 0 : index
    %39 = vector.load %arg4[%c0_15, %c0_16, %c0_17] : memref<1x3x1024xf32, #tpu.memory_space<vmem>>, vector<1x3x1024xf32>
    tpu.vector_store %arg4[%c0_15, %c0_16, %c0_17], %38 {strides = array<i32>} : memref<1x3x1024xf32, #tpu.memory_space<vmem>>, vector<1x3x1024xf32>,
    return
  }
  func.func @transform_0(%arg0: i32) -> (i32, i32) {
    %c0_i32 = arith.constant 0 : i32
    %c0_i32_0 = arith.constant 0 : i32
    return %arg0, %c0_i32 : i32, i32
  }
  func.func @transform_1(%arg0: i32) -> (i32, i32) {
    %c0_i32 = arith.constant 0 : i32
    %c0_i32_0 = arith.constant 0 : i32
    return %arg0, %c0_i32 : i32, i32
  }
  func.func @transform_2(%arg0: i32) -> (i32, i32) {
    %c0_i32 = arith.constant 0 : i32
    %c0_i32_0 = arith.constant 0 : i32
    return %arg0, %c0_i32 : i32, i32
  }
  func.func @transform_3(%arg0: i32) -> (i32, i32, i32) {
    %c0_i32 = arith.constant 0 : i32
    %c0_i32_0 = arith.constant 0 : i32
    %c0_i32_1 = arith.constant 0 : i32
    return %arg0, %c0_i32, %c0_i32_0 : i32, i32, i32
  }
}

</mosaic_0001>

<bundles_post_ra>
// kernel: focal_bce_wbce_loss.1
= control target key start
LH: loop header
LB: loop body
LE: loop exit
PB: predicated region body
PF: predicated region fallthrough
CT: control target
= control target key end

     0   :  { %s1119_s0 = inlined_call_operand.vmem [shape: f32[7,1024], index: 0, kind: input, shape index: {}]   ;;  %s1120_s1 = inlined_call_operand.vmem [shape: f32[7,1024], index: 1, kind: input, shape index: {}]   ;;  %s1121_s2 = inlined_call_operand.vmem [shape: f32[7,1024], index: 2, kind: input, shape index: {}]   ;;  %s1122_s3 = inlined_call_operand.vmem [shape: f32[1,3,1024], index: 3, kind: output, shape index: {}]  }
   0x1   :  { %v557_v0 = vld [vmem:[%s1119_s0] sm:$0x7f]  ;;  %v562_v1 = vld [vmem:[%s1119_s0 + $0x8] sm:$0x7f]  ;;  %v567_v2 = vld [vmem:[%s1119_s0 + $0x10] sm:$0x7f] }
   0x2   :  { %v572_v3 = vld [vmem:[%s1119_s0 + $0x18] sm:$0x7f]  ;;  %v577_v4 = vld [vmem:[%s1119_s0 + $0x20] sm:$0x7f]  ;;  %v582_v5 = vld [vmem:[%s1119_s0 + $0x28] sm:$0x7f] }
   0x3   :  { %v587_v6 = vld [vmem:[%s1119_s0 + $0x30] sm:$0x7f]  ;;  %v592_v7 = vld [vmem:[%s1119_s0 + $0x38] sm:$0x7f]  ;;  %v38_v8 = vand.u32 2147483647, %v557_v0 }
   0x4   :  { %v39_v9 = vand.u32 2147483647, %v562_v1  ;;  %v40_v10 = vand.u32 2147483647, %v567_v2  ;;  %v41_v11 = vand.u32 2147483647, %v572_v3 }
   0x5   :  { %v42_v12 = vand.u32 2147483647, %v577_v4  ;;  %v43_v13 = vand.u32 2147483647, %v582_v5  ;;  %v44_v14 = vand.u32 2147483647, %v587_v6 }
   0x6   :  { %v45_v15 = vand.u32 2147483647, %v592_v7  ;;  %v46_v16 = vsub.f32 0.0, %v38_v8  ;;  %v47_v17 = vsub.f32 0.0, %v39_v9  ;;  %v48_v18 = vsub.f32 0.0, %v40_v10 }
   0x7   :  { %v49_v19 = vsub.f32 0.0, %v41_v11  ;;  %v50_v20 = vsub.f32 0.0, %v42_v12  ;;  %v51_v21 = vsub.f32 0.0, %v43_v13  ;;  %v52_v22 = vsub.f32 0.0, %v44_v14  ;;  %v605_v26 = vld [vmem:[%s1120_s1] sm:$0x7f] }
   0x8   :  { %v53_v23 = vsub.f32 0.0, %v45_v15  ;;  %v54_v24 = vmul.f32 1.442695, %v46_v16  ;;  %v56_v25 = vmul.f32 1.442695, %v47_v17  ;;  %v150_v30 = vmul.f32 %v605_v26, %v557_v0 }
   0x9   :  { %v58_v27 = vmul.f32 1.442695, %v48_v18  ;;  %v60_v28 = vmul.f32 1.442695, %v49_v19  ;;  %v62_v29 = vmul.f32 1.442695, %v50_v20 }
   0xa   :  { %486 = vpow2.f32 %v54_v24  ;;  %v64_v31 = vmul.f32 1.442695, %v51_v21  ;;  %v66_v32 = vmul.f32 1.442695, %v52_v22  ;;  %v68_v33 = vmul.f32 1.442695, %v53_v23 }
   0xb   :  { %488 = vpow2.f32 %v56_v25  ;;  %v612_v34 = vld [vmem:[%s1120_s1 + $0x8] sm:$0x7f]  ;;  %v142_v35 = vmax.f32 %v557_v0, 0.0  ;;  %v143_v36 = vmax.f32 %v562_v1, 0.0  ;;  %v144_v37 = vmax.f32 %v567_v2, 0.0 }
   0xc   :  { %490 = vpow2.f32 %v58_v27  ;;  %v620_v38 = vld [vmem:[%s1120_s1 + $0x10] sm:$0x7f]  ;;  %v145_v39 = vmax.f32 %v572_v3, 0.0  ;;  %v628_v42 = vld [vmem:[%s1120_s1 + $0x18] sm:$0x7f]  ;;  %v151_v46 = vmul.f32 %v612_v34, %v562_v1  ;;  %vm174_vm8 = vcmp.ge.f32.partialorder %v557_v0, 0.0 }
   0xd   :  { %492 = vpow2.f32 %v60_v28  ;;  %v633_v43 = vld [vmem:[%s1120_s1 + $0x20] sm:$0x7f]  ;;  %v642_v47 = vld [vmem:[%s1120_s1 + $0x28] sm:$0x7f]  ;;  %v647_v48 = vld [vmem:[%s1120_s1 + $0x30] sm:$0x7f]  ;;  %v152_v50 = vmul.f32 %v620_v38, %v567_v2  ;;  %v153_v51 = vmul.f32 %v628_v42, %v572_v3  ;;  %v683_v61 = vsub.f32 %v142_v35, %v150_v30 }
   0xe   :  { %494 = vpow2.f32 %v62_v29  ;;  %v652_v49 = vld [vmem:[%s1120_s1 + $0x38] sm:$0x7f]  ;;  %v660_v52 = vmul.f32 %v633_v43, %v577_v4  ;;  %v666_v54 = vmul.f32 %v642_v47, %v582_v5  ;;  %v670_v55 = vmul.f32 %v647_v48, %v587_v6  ;;  %v35_v23 = vld [vmem:[%s1121_s2 + $0x28] sm:$0x7f] }
   0xf   :  { %496 = vpow2.f32 %v64_v31  ;;  %v674_v56 = vmul.f32 %v652_v49, %v592_v7  ;;  %v698_v12 = vsub.f32 %v143_v36, %v151_v46  ;;  %v700_v13 = vsub.f32 %v144_v37, %v152_v50 }
  0x10   :  { %v662_v53 = vpop.eup %486  ;;  %498 = vpow2.f32 %v66_v32  ;;  %v716_v21 = vsub.f32 %v145_v39, %v153_v51  ;;  %vm175_vm9 = vcmp.ge.f32.partialorder %v562_v1, 0.0  ;;  %vm176_vm10 = vcmp.ge.f32.partialorder %v567_v2, 0.0 }
  0x11   :  { %v676_v57 = vpop.eup %488  ;;  %v679_v58 = vadd.f32 1.0, %v662_v53  ;;  %v73_v59 = vmul.f32 -0.5, %v662_v53  ;;  %v76_v60 = vand.u32 2147483647, %v662_v53  ;;  %500 = vpow2.f32 %v68_v33 }
  0x12   :  { %v685_v62 = vpop.eup %490  ;;  %v688_v63 = vadd.f32 1.0, %v676_v57  ;;  %v82_v8 = vmul.f32 -0.5, %v676_v57  ;;  %v85_v9 = vand.u32 2147483647, %v676_v57  ;;  %vm177_vm11 = vcmp.ge.f32.partialorder %v572_v3, 0.0 }
  0x13   :  { %v692_v10 = vpop.eup %492  ;;  %502 = vlog2.f32 %v679_v58  ;;  %v696_v11 = vadd.f32 1.0, %v685_v62  ;;  %v74_v15 = vadd.f32 1.0, %v73_v59  ;;  %v91_v17 = vmul.f32 -0.5, %v685_v62 }
  0x14   :  { %v702_v14 = vpop.eup %494  ;;  %504 = vlog2.f32 %v688_v63  ;;  %v83_v16 = vadd.f32 1.0, %v82_v8  ;;  %vm708_vm0 = vcmp.lt.f32.partialorder %v76_v60, 0.0004427343  ;;  %v714_v20 = vadd.f32 1.0, %v692_v10 }
  0x15   :  { %v706_v18 = vpop.eup %496  ;;  %506 = vlog2.f32 %v696_v11  ;;  %vm720_vm1 = vcmp.lt.f32.partialorder %v85_v9, 0.0004427343  ;;  %v92_v24 = vadd.f32 1.0, %v91_v17  ;;  %v94_v25 = vand.u32 2147483647, %v685_v62 }
  0x16   :  { %v718_v22 = vpop.eup %498  ;;  %v100_v27 = vmul.f32 -0.5, %v692_v10  ;;  %508 = vlog2.f32 %v714_v20  ;;  %v103_v28 = vand.u32 2147483647, %v692_v10  ;;  %v729_v29 = vadd.f32 1.0, %v702_v14 }
  0x17   :  { %v109_v30 = vmul.f32 -0.5, %v702_v14  ;;  %v732_v31 = vpop.eup %500  ;;  %v75_v32 = vmul.f32 %v662_v53, %v74_v15  ;;  %v84_v33 = vmul.f32 %v676_v57, %v83_v16  ;;  %v112_v36 = vand.u32 2147483647, %v702_v14 }
  0x18   :  { %v101_v35 = vadd.f32 1.0, %v100_v27  ;;  %510 = vlog2.f32 %v729_v29  ;;  %v739_v46 = vadd.f32 1.0, %v706_v18  ;;  %v118_v50 = vmul.f32 -0.5, %v706_v18 }
  0x19   :  { %v503_v37 = vpop.eup %502  ;;  %v110_v39 = vadd.f32 1.0, %v109_v30  ;;  %v93_v60 = vmul.f32 %v685_v62, %v92_v24  ;;  %vm743_vm2 = vcmp.lt.f32.partialorder %v94_v25, 0.0004427343  ;;  %v121_v9 = vand.u32 2147483647, %v706_v18 }
  0x1a   :  { %1129 = vst [vmem:[#allocation2_spill] sm:$0xff] %v739_v46  ;;  %v505_v51 = vpop.eup %504  ;;  %v72_v59 = vmul.f32 0.6931472, %v503_v37  ;;  %v102_v17 = vmul.f32 %v692_v10, %v101_v35  ;;  %vm749_vm3 = vcmp.lt.f32.partialorder %v103_v28, 0.0004427343  ;;  %512 = vlog2.f32 %v739_v46 }
  0x1b   :  { %v507_v15 = vpop.eup %506  ;;  %v81_v16 = vmul.f32 0.6931472, %v505_v51  ;;  %vm754_vm4 = vcmp.lt.f32.partialorder %v112_v36, 0.0004427343  ;;  %v119_v24 = vadd.f32 1.0, %v118_v50  ;;  %v759_v25 = vadd.f32 1.0, %v718_v22 }
  0x1c   :  { %v90_v30 = vmul.f32 0.6931472, %v507_v15  ;;  %v509_v45 = vpop.eup %508  ;;  %v78_v51 = vsel %vm708_vm0, %v75_v32, %v72_v59  ;;  %v111_v28 = vmul.f32 %v702_v14, %v110_v39  ;;  %v127_v35 = vmul.f32 -0.5, %v718_v22 }
  0x1d   :  { %1136 = vst [vmem:[#allocation3_spill] sm:$0xff] %v759_v25  ;;  %v130_v44 = vand.u32 2147483647, %v718_v22  ;;  %v99_v41 = vmul.f32 0.6931472, %v509_v45  ;;  %514 = vlog2.f32 %v759_v25  ;;  %v772_v50 = vadd.f32 1.0, %v732_v31 }
  0x1e   :  { %vm766_vm5 = vcmp.lt.f32.partialorder %v121_v9, 0.0004427343  ;;  %v511_v15 = vpop.eup %510  ;;  %v87_v19 = vsel %vm720_vm1, %v84_v33, %v81_v16  ;;  %v128_v32 = vadd.f32 1.0, %v127_v35  ;;  %v136_v39 = vmul.f32 -0.5, %v732_v31 }
  0x1f   :  { %v139_v59 = vand.u32 2147483647, %v732_v31  ;;  %v96_v45 = vsel %vm743_vm2, %v93_v60, %v90_v30  ;;  %v108_v9 = vmul.f32 0.6931472, %v511_v15  ;;  %v120_v40 = vmul.f32 %v706_v18, %v119_v24 }
  0x20   :  { %516 = vlog2.f32 %v772_v50  ;;  %v513_v25 = vpop.eup %512  ;;  %v105_v46 = vsel %vm749_vm3, %v102_v17, %v99_v41  ;;  %vm784_vm6 = vcmp.lt.f32.partialorder %v130_v44, 0.0004427343  ;;  %v137_v33 = vadd.f32 1.0, %v136_v39 }
  0x21   :  { %v1141_v16 = vmax.f32 %v577_v4, 0.0  ;;  %v114_v60 = vsel %vm754_vm4, %v111_v28, %v108_v9  ;;  %v117_v8 = vmul.f32 0.6931472, %v513_v25  ;;  %v129_v30 = vmul.f32 %v718_v22, %v128_v32 }
  0x22   :  { %v1142_v24 = vmax.f32 %v582_v5, 0.0  ;;  %v138_v41 = vmul.f32 %v732_v31, %v137_v33  ;;  %vm798_vm7 = vcmp.lt.f32.partialorder %v139_v59, 0.0004427343  ;;  %v1145_v17 = vmax.f32 %v587_v6, 0.0 }
  0x23   :  { %v162_v35 = vsub.f32 %v1141_v16, %v660_v52  ;;  %v1146_v37 = vmax.f32 %v592_v7, 0.0  ;;  %v515_v28 = vpop.eup %514  ;;  %v123_v15 = vsel %vm766_vm5, %v120_v40, %v117_v8  ;;  %v814_v32 = vadd.f32 %v698_v12, %v87_v19  ;;  %v30_v40 = vld [vmem:[%s1121_s2] sm:$0x7f] }
  0x24   :  { %v163_v27 = vsub.f32 %v1142_v24, %v666_v54  ;;  %v164_v52 = vsub.f32 %v1145_v17, %v670_v55  ;;  %v811_v54 = vadd.f32 %v683_v61, %v78_v51  ;;  %v817_v39 = vadd.f32 %v700_v13, %v96_v45  ;;  %v31_v13 = vld [vmem:[%s1121_s2 + $0x8] sm:$0x7f]  ;;  %v34_v51 = vld [vmem:[%s1121_s2 + $0x20] sm:$0x7f] }
  0x25   :  { %v165_v25 = vsub.f32 %v1146_v37, %v674_v56  ;;  %v126_v59 = vmul.f32 0.6931472, %v515_v28  ;;  %v820_v55 = vadd.f32 %v716_v21, %v105_v46  ;;  %v822_v9 = vadd.f32 %v162_v35, %v114_v60 }
  0x26   :  { %v517_v56 = vpop.eup %516  ;;  %v825_v36 = vadd.f32 %v163_v27, %v123_v15  ;;  %vm178_vm12 = vcmp.ge.f32.partialorder %v577_v4, 0.0  ;;  %vm182_vm13 = vcmp.ge.f32.partialorder %v605_v26, 0.5  ;;  %vm179_vm14 = vcmp.ge.f32.partialorder %v582_v5, 0.0  ;;  %v32_v26 = vld [vmem:[%s1121_s2 + $0x10] sm:$0x7f] }
  0x27   :  { %v132_v61 = vsel %vm784_vm6, %v129_v30, %v126_v59  ;;  %v135_v12 = vmul.f32 0.6931472, %v517_v56  ;;  %vm183_vm15 = vcmp.ge.f32.partialorder %v612_v34, 0.5  ;;  %vm184_vm0 = vcmp.ge.f32.partialorder %v620_v38, 0.5  ;;  %vm846_vm2 = vmxor %vm174_vm8, %vm182_vm13  ;;  %v33_v34 = vld [vmem:[%s1121_s2 + $0x18] sm:$0x7f] }
  0x28   :  { %vm185_vm1 = vcmp.ge.f32.partialorder %v628_v42, 0.5  ;;  %vm180_vm3 = vcmp.ge.f32.partialorder %v587_v6, 0.0  ;;  %vm181_vm4 = vcmp.ge.f32.partialorder %v592_v7, 0.0  ;;  %vm186_vm5 = vcmp.ge.f32.partialorder %v633_v43, 0.5  ;;  %vm860_vm6 = vmxor %vm175_vm9, %vm183_vm15  ;;  %v36_v42 = vld [vmem:[%s1121_s2 + $0x30] sm:$0x7f] }
  0x29   :  { %v141_v46 = vsel %vm798_vm7, %v138_v41, %v135_v12  ;;  %v870_v19 = vadd.f32 %v164_v52, %v132_v61  ;;  %vm187_vm7 = vcmp.ge.f32.partialorder %v642_v47, 0.5  ;;  %vm188_vm8 = vcmp.ge.f32.partialorder %v647_v48, 0.5  ;;  %vm880_vm9 = vmxor %vm176_vm10, %vm184_vm0  ;;  %v37_v4 = vld [vmem:[%s1121_s2 + $0x38] sm:$0x7f]  ;;  %v1164_v48 = vld [vmem:[#allocation3_spill] sm:$0xff] }
  0x2a   :  { %v872_v45 = vadd.f32 %v165_v25, %v141_v46  ;;  %vm189_vm13 = vcmp.ge.f32.partialorder %v652_v49, 0.5  ;;  %vm892_vm15 = vmxor %vm177_vm11, %vm185_vm1  ;;  %v198_v2 = vsel %vm846_vm2, %v662_v53, 1.0  ;;  %v199_v38 = vsel %vm860_vm6, %v676_v57, 1.0 }
  0x2b   :  { %518 = vrcp.f32 %v679_v58  ;;  %vm910_vm10 = vmxor %vm178_vm12, %vm186_vm5  ;;  %v200_v53 = vsel %vm880_vm9, %v685_v62, 1.0  ;;  %v919_v57 = vmul.f32 %v811_v54, %v30_v40  ;;  %v922_v58 = vmul.f32 %v814_v32, %v31_v13 }
  0x2c   :  { %520 = vrcp.f32 %v688_v63  ;;  %vm931_vm11 = vmxor %vm179_vm14, %vm187_vm7  ;;  %v201_v62 = vsel %vm892_vm15, %v692_v10, 1.0  ;;  %v940_v63 = vmul.f32 %v817_v39, %v32_v26  ;;  %v943_v16 = vmul.f32 %v820_v55, %v33_v34 }
  0x2d   :  { %522 = vrcp.f32 %v696_v11  ;;  %v202_v5 = vsel %vm910_vm10, %v702_v14, 1.0  ;;  %v950_v47 = vmul.f32 %v822_v9, %v34_v51  ;;  %v953_v35 = vmul.f32 %v825_v36, %v35_v23  ;;  %vm966_vm14 = vmxor %vm180_vm3, %vm188_vm8 }
  0x2e   :  { %524 = vrcp.f32 %v714_v20  ;;  %v203_v10 = vsel %vm931_vm11, %v706_v18, 1.0  ;;  %v960_v11 = vmul.f32 %v870_v19, %v36_v42  ;;  %vm270_vm12 = vcmask 1046528   ;;  %v1161_v20 = vld [vmem:[#allocation2_spill] sm:$0xff]  ;;  %vm982_vm0 = vmxor %vm181_vm4, %vm189_vm13 }
  0x2f   :  { %526 = vrcp.f32 %v729_v29  ;;  %v972_v60 = vmul.f32 %v872_v45, %v37_v4  ;;  %v327_v18 = vsel %vm270_vm12, %v811_v54, 0.0  ;;  %v334_v29 = vsel %vm270_vm12, %v814_v32, 0.0 }
  0x30   :  { %528 = vrcp.f32 %v1161_v20  ;;  %v328_v30 = vrot.slane %v327_v18, 4  ;;  %v335_v24 = vrot.slane %v334_v29, 4  ;;  %v341_v27 = vsel %vm270_vm12, %v817_v39, 0.0 }
  0x31   :  { %v519_v8 = vpop.eup %518  ;;  %530 = vrcp.f32 %v1164_v48  ;;  %v342_v17 = vrot.slane %v341_v27, 4  ;;  %v992_v49 = vsel %vm270_vm12, %v820_v55, 0.0  ;;  %v204_v52 = vsel %vm966_vm14, %v718_v22, 1.0 }
  0x32   :  { %v521_v41 = vpop.eup %520  ;;  %532 = vrcp.f32 %v772_v50  ;;  %v222_v44 = vmul.f32 %v519_v8, %v198_v2  ;;  %v329_v25 = vadd.f32 %v328_v30, %v327_v18  ;;  %v997_v28 = vadd.f32 %v335_v24, %v334_v29 }
  0x33   :  { %v523_v7 = vpop.eup %522  ;;  %v223_v37 = vmul.f32 %v521_v41, %v199_v38  ;;  %v205_v50 = vsel %vm982_vm0, %v732_v31, 1.0  ;;  %v349_v40 = vrot.slane %v992_v49, 4  ;;  %v1003_v26 = vadd.f32 %v342_v17, %v341_v27 }
  0x34   :  { %v525_v15 = vpop.eup %524  ;;  %v224_v59 = vmul.f32 %v523_v7, %v200_v53  ;;  %v230_v56 = vsub.f32 1.0, %v222_v44  ;;  %v330_v21 = vrot.slane %v329_v25, 2  ;;  %v337_v51 = vrot.slane %v997_v28, 2 }
  0x35   :  { %v527_v61 = vpop.eup %526  ;;  %v225_v12 = vmul.f32 %v525_v15, %v201_v62  ;;  %v231_v13 = vsub.f32 1.0, %v223_v37  ;;  %vm439_vm1 = vcmask 1040384   ;;  %vm448_vm2 = vcmask 1041408  }
  0x36   :  { %v529_v22 = vpop.eup %528  ;;  %v226_v46 = vmul.f32 %v527_v61, %v202_v5  ;;  %v232_v0 = vsub.f32 1.0, %v224_v59  ;;  %v238_v34 = vmul.f32 %v230_v56, %v230_v56  ;;  %v1006_v2 = vadd.f32 %v330_v21, %v329_v25 }
  0x37   :  { %v531_v1 = vpop.eup %530  ;;  %v227_v23 = vmul.f32 %v529_v22, %v203_v10  ;;  %v233_v33 = vsub.f32 1.0, %v225_v12  ;;  %v239_v31 = vmul.f32 %v231_v13, %v231_v13  ;;  %vm469_vm3 = vcmask 1043456  }
  0x38   :  { %v533_v38 = vpop.eup %532  ;;  %v228_v42 = vmul.f32 %v531_v1, %v204_v52  ;;  %v234_v3 = vsub.f32 1.0, %v226_v46  ;;  %v240_v53 = vmul.f32 %v232_v0, %v232_v0  ;;  %v246_v4 = vmul.f32 0.25, %v238_v34 }
  0x39   :  { %v229_v43 = vmul.f32 %v533_v38, %v205_v50  ;;  %v235_v62 = vsub.f32 1.0, %v227_v23  ;;  %v241_v14 = vmul.f32 %v233_v33, %v233_v33  ;;  %v247_v20 = vmul.f32 0.25, %v239_v31 }
  0x3a   :  { %v236_v5 = vsub.f32 1.0, %v228_v42  ;;  %v242_v18 = vmul.f32 %v234_v3, %v234_v3  ;;  %v248_v29 = vmul.f32 0.25, %v240_v53  ;;  %v254_v8 = vmul.f32 %v246_v4, %v811_v54 }
  0x3b   :  { %v237_v6 = vsub.f32 1.0, %v229_v43  ;;  %v243_v10 = vmul.f32 %v235_v62, %v235_v62  ;;  %v249_v48 = vmul.f32 0.25, %v241_v14  ;;  %v255_v30 = vmul.f32 %v247_v20, %v814_v32 }
  0x3c   :  { %v244_v24 = vmul.f32 %v236_v5, %v236_v5  ;;  %v250_v27 = vmul.f32 0.25, %v242_v18  ;;  %v256_v41 = vmul.f32 %v248_v29, %v817_v39  ;;  %v271_v44 = vsel %vm270_vm12, %v254_v8, 0.0 }
  0x3d   :  { %v245_v17 = vmul.f32 %v237_v6, %v237_v6  ;;  %v251_v7 = vmul.f32 0.25, %v243_v10  ;;  %v257_v52 = vmul.f32 %v249_v48, %v820_v55  ;;  %v272_v37 = vrot.slane %v271_v44, 4 }
  0x3e   :  { %v252_v25 = vmul.f32 0.25, %v244_v24  ;;  %v258_v15 = vmul.f32 %v250_v27, %v822_v9  ;;  %v278_v54 = vsel %vm270_vm12, %v255_v30, 0.0  ;;  %v285_v50 = vsel %vm270_vm12, %v256_v41, 0.0 }
  0x3f   :  { %v253_v59 = vmul.f32 0.25, %v245_v17  ;;  %v259_v32 = vmul.f32 %v251_v7, %v825_v36  ;;  %v273_v56 = vadd.f32 %v272_v37, %v271_v44  ;;  %v279_v61 = vrot.slane %v278_v54, 4 }
  0x40   :  { %v260_v39 = vmul.f32 %v252_v25, %v870_v19  ;;  %v286_v12 = vrot.slane %v285_v50, 4  ;;  %v292_v13 = vsel %vm270_vm12, %v257_v52, 0.0  ;;  %v299_v55 = vsel %vm270_vm12, %v258_v15, 0.0 }
  0x41   :  { %v261_v21 = vmul.f32 %v253_v59, %v872_v45  ;;  %v274_v22 = vrot.slane %v273_v56, 2  ;;  %v280_v46 = vadd.f32 %v279_v61, %v278_v54  ;;  %v293_v0 = vrot.slane %v292_v13, 4 }
  0x42   :  { %v287_v34 = vadd.f32 %v286_v12, %v285_v50  ;;  %v300_v1 = vrot.slane %v299_v55, 4  ;;  %v306_v23 = vsel %vm270_vm12, %v259_v32, 0.0  ;;  %v313_v33 = vsel %vm270_vm12, %v260_v39, 0.0 }
  0x43   :  { %v275_v31 = vadd.f32 %v274_v22, %v273_v56  ;;  %v281_v38 = vrot.slane %v280_v46, 2  ;;  %v294_v42 = vadd.f32 %v293_v0, %v292_v13  ;;  %v307_v3 = vrot.slane %v306_v23, 4 }
  0x44   :  { %v288_v53 = vrot.slane %v287_v34, 2  ;;  %v301_v4 = vadd.f32 %v300_v1, %v299_v55  ;;  %v314_v43 = vrot.slane %v313_v33, 4  ;;  %v320_v62 = vsel %vm270_vm12, %v261_v21, 0.0 }
  0x45   :  { %v276_v14 = vrot.slane %v275_v31, 1  ;;  %v282_v20 = vadd.f32 %v281_v38, %v280_v46  ;;  %v295_v5 = vrot.slane %v294_v42, 2  ;;  %v308_v18 = vadd.f32 %v307_v3, %v306_v23 }
  0x46   :  { %v289_v29 = vadd.f32 %v288_v53, %v287_v34  ;;  %v302_v8 = vrot.slane %v301_v4, 2  ;;  %v315_v6 = vadd.f32 %v314_v43, %v313_v33  ;;  %v321_v10 = vrot.slane %v320_v62, 4 }
  0x47   :  { %v283_v48 = vrot.slane %v282_v20, 1  ;;  %v296_v30 = vadd.f32 %v295_v5, %v294_v42  ;;  %v309_v24 = vrot.slane %v308_v18, 2  ;;  %v344_v27 = vrot.slane %v1003_v26, 2 }
  0x48   :  { %v290_v41 = vrot.slane %v289_v29, 1  ;;  %v303_v44 = vadd.f32 %v302_v8, %v301_v4  ;;  %v316_v17 = vrot.slane %v315_v6, 2  ;;  %v322_v7 = vadd.f32 %v321_v10, %v320_v62 }
  0x49   :  { %v297_v52 = vrot.slane %v296_v30, 1  ;;  %v310_v37 = vadd.f32 %v309_v24, %v308_v18  ;;  %v332_v25 = vrot.slane %v1006_v2, 1  ;;  %v355_v15 = vsel %vm270_vm12, %v822_v9, 0.0 }
  0x4a   :  { %v1028_v54 = vadd.f32 %v276_v14, %v275_v31  ;;  %v304_v50 = vrot.slane %v303_v44, 1  ;;  %v317_v59 = vadd.f32 %v316_v17, %v315_v6  ;;  %v323_v32 = vrot.slane %v322_v7, 2 }
  0x4b   :  { %v1030_v56 = vadd.f32 %v283_v48, %v282_v20  ;;  %v1032_v61 = vadd.f32 %v290_v41, %v289_v29  ;;  %v311_v39 = vrot.slane %v310_v37, 1  ;;  %v338_v12 = vadd.f32 %v337_v51, %v997_v28 }
  0x4c   :  { %v1037_v13 = vadd.f32 %v297_v52, %v296_v30  ;;  %v318_v55 = vrot.slane %v317_v59, 1  ;;  %v324_v21 = vadd.f32 %v323_v32, %v322_v7  ;;  %v345_v9 = vadd.f32 %v344_v27, %v1003_v26 }
  0x4d   :  { %v1041_v22 = vadd.f32 %v332_v25, %v1006_v2  ;;  %v339_v46 = vrot.slane %v338_v12, 1  ;;  %v350_v0 = vadd.f32 %v349_v40, %v992_v49  ;;  %v356_v34 = vrot.slane %v355_v15, 4 }
  0x4e   :  { %v1046_v1 = vadd.f32 %v304_v50, %v303_v44  ;;  %v1048_v23 = vadd.f32 %v311_v39, %v310_v37  ;;  %v1050_v28 = vadd.f32 %v318_v55, %v317_v59  ;;  %v362_v51 = vsel %vm270_vm12, %v825_v36, 0.0 }
  0x4f   :  { %v325_v33 = vrot.slane %v324_v21, 1  ;;  %v351_v26 = vrot.slane %v350_v0, 2  ;;  %v357_v31 = vadd.f32 %v356_v34, %v355_v15  ;;  %v363_v2 = vrot.slane %v362_v51, 4 }
  0x50   :  { %v1054_v38 = vadd.f32 %v339_v46, %v338_v12  ;;  %v346_v42 = vrot.slane %v345_v9, 1  ;;  %v369_v49 = vsel %vm270_vm12, %v870_v19, 0.0  ;;  %v376_v40 = vsel %vm270_vm12, %v872_v45, 0.0 }
  0x51   :  { %v352_v3 = vadd.f32 %v351_v26, %v350_v0  ;;  %v358_v53 = vrot.slane %v357_v31, 2  ;;  %v364_v4 = vadd.f32 %v363_v2, %v362_v51  ;;  %v370_v43 = vrot.slane %v369_v49, 4 }
  0x52   :  { %v377_v62 = vrot.slane %v376_v40, 4  ;;  %v383_v36 = vsel %vm270_vm12, %v919_v57, 0.0  ;;  %v390_v14 = vsel %vm270_vm12, %v922_v58, 0.0  ;;  %v397_v20 = vsel %vm270_vm12, %v940_v63, 0.0 }
  0x53   :  { %v1066_v5 = vadd.f32 %v325_v33, %v324_v21  ;;  %v359_v19 = vadd.f32 %v358_v53, %v357_v31  ;;  %v365_v18 = vrot.slane %v364_v4, 2  ;;  %v371_v29 = vadd.f32 %v370_v43, %v369_v49 }
  0x54   :  { %v378_v45 = vadd.f32 %v377_v62, %v376_v40  ;;  %v384_v8 = vrot.slane %v383_v36, 4  ;;  %v391_v6 = vrot.slane %v390_v14, 4  ;;  %v398_v10 = vrot.slane %v397_v20, 4 }
  0x55   :  { %v1068_v48 = vadd.f32 %v346_v42, %v345_v9  ;;  %v353_v30 = vrot.slane %v352_v3, 1  ;;  %v366_v24 = vadd.f32 %v365_v18, %v364_v4  ;;  %v372_v57 = vrot.slane %v371_v29, 2 }
  0x56   :  { %v379_v27 = vrot.slane %v378_v45, 2  ;;  %v385_v41 = vadd.f32 %v384_v8, %v383_v36  ;;  %v392_v58 = vadd.f32 %v391_v6, %v390_v14  ;;  %v399_v44 = vadd.f32 %v398_v10, %v397_v20 }
  0x57   :  { %v360_v17 = vrot.slane %v359_v19, 1  ;;  %v367_v63 = vrot.slane %v366_v24, 1  ;;  %v373_v7 = vadd.f32 %v372_v57, %v371_v29  ;;  %v404_v52 = vsel %vm270_vm12, %v943_v16, 0.0 }
  0x58   :  { %v380_v37 = vadd.f32 %v379_v27, %v378_v45  ;;  %v386_v25 = vrot.slane %v385_v41, 2  ;;  %v393_v15 = vrot.slane %v392_v58, 2  ;;  %v400_v50 = vrot.slane %v399_v44, 2 }
  0x59   :  { %v354_v59 = vadd.f32 %v353_v30, %v352_v3  ;;  %v374_v32 = vrot.slane %v373_v7, 1  ;;  %v405_v39 = vrot.slane %v404_v52, 4  ;;  %v411_v12 = vsel %vm270_vm12, %v950_v47, 0.0 }
  0x5a   :  { %v381_v55 = vrot.slane %v380_v37, 1  ;;  %v387_v21 = vadd.f32 %v386_v25, %v385_v41  ;;  %v394_v9 = vadd.f32 %v393_v15, %v392_v58  ;;  %v401_v46 = vadd.f32 %v400_v50, %v399_v44 }
  0x5b   :  { %v361_v0 = vadd.f32 %v360_v17, %v359_v19  ;;  %v406_v34 = vadd.f32 %v405_v39, %v404_v52  ;;  %v412_v51 = vrot.slane %v411_v12, 4  ;;  %v418_v16 = vsel %vm270_vm12, %v953_v35, 0.0 }
  0x5c   :  { %v368_v33 = vadd.f32 %v367_v63, %v366_v24  ;;  %v388_v26 = vrot.slane %v387_v21, 1  ;;  %v395_v31 = vrot.slane %v394_v9, 1  ;;  %v402_v2 = vrot.slane %v401_v46, 1 }
  0x5d   :  { %v407_v42 = vrot.slane %v406_v34, 2  ;;  %v413_v49 = vadd.f32 %v412_v51, %v411_v12  ;;  %v419_v40 = vrot.slane %v418_v16, 4  ;;  %v425_v47 = vsel %vm270_vm12, %v960_v11, 0.0 }
  0x5e   :  { %v375_v3 = vadd.f32 %v374_v32, %v373_v7  ;;  %v382_v53 = vadd.f32 %v381_v55, %v380_v37  ;;  %v389_v4 = vadd.f32 %v388_v26, %v387_v21  ;;  %v426_v43 = vrot.slane %v425_v47, 4 }
  0x5f   :  { %v408_v62 = vadd.f32 %v407_v42, %v406_v34  ;;  %v414_v36 = vrot.slane %v413_v49, 2  ;;  %v420_v14 = vadd.f32 %v419_v40, %v418_v16  ;;  %v432_v35 = vsel %vm270_vm12, %v972_v60, 0.0 }
  0x60   :  { %v396_v20 = vadd.f32 %v395_v31, %v394_v9  ;;  %v427_v19 = vadd.f32 %v426_v43, %v425_v47  ;;  %v433_v18 = vrot.slane %v432_v35, 4  ;;  %v403_v29 = vadd.f32 %v402_v2, %v401_v46 }
  0x61   :  { %v409_v45 = vrot.slane %v408_v62, 1  ;;  %v415_v8 = vadd.f32 %v414_v36, %v413_v49  ;;  %v421_v6 = vrot.slane %v420_v14, 2  ;;  %v440_v30 = vsel %vm439_vm1, %v1028_v54, %v1041_v22 }
  0x62   :  { %v428_v10 = vrot.slane %v427_v19, 2  ;;  %v434_v11 = vadd.f32 %v433_v18, %v432_v35  ;;  %v441_v60 = vsel %vm439_vm1, %v1030_v56, %v1054_v38  ;;  %v442_v44 = vsel %vm439_vm1, %v1032_v61, %v1068_v48 }
  0x63   :  { %v410_v24 = vadd.f32 %v409_v45, %v408_v62  ;;  %v416_v57 = vrot.slane %v415_v8, 1  ;;  %v422_v27 = vadd.f32 %v421_v6, %v420_v14  ;;  %v443_v17 = vsel %vm439_vm1, %v1037_v13, %v354_v59 }
  0x64   :  { %v429_v41 = vadd.f32 %v428_v10, %v427_v19  ;;  %v435_v58 = vrot.slane %v434_v11, 2  ;;  %v444_v54 = vsel %vm439_vm1, %v1046_v1, %v361_v0  ;;  %v445_v22 = vsel %vm439_vm1, %v1048_v23, %v368_v33 }
  0x65   :  { %v417_v63 = vadd.f32 %v416_v57, %v415_v8  ;;  %v423_v7 = vrot.slane %v422_v27, 1  ;;  %v446_v56 = vsel %vm439_vm1, %v1050_v28, %v375_v3  ;;  %v450_v38 = vsel %vm448_vm2, %v441_v60, %v396_v20 }
  0x66   :  { %v430_v52 = vrot.slane %v429_v41, 1  ;;  %v436_v37 = vadd.f32 %v435_v58, %v434_v11  ;;  %v449_v61 = vsel %vm448_vm2, %v440_v30, %v389_v4  ;;  %v451_v13 = vsel %vm448_vm2, %v442_v44, %v403_v29 }
  0x67   :  { %v424_v25 = vadd.f32 %v423_v7, %v422_v27  ;;  %v452_v48 = vsel %vm448_vm2, %v443_v17, %v410_v24  ;;  %v465_v1 = vrot.slane %v450_v38, 4  ;;  %v447_v23 = vsel %vm439_vm1, %v1066_v5, %v382_v53 }
  0x68   :  { %v431_v15 = vadd.f32 %v430_v52, %v429_v41  ;;  %v437_v50 = vrot.slane %v436_v37, 1  ;;  %v466_v59 = vrot.slane %v452_v48, 4  ;;  %v453_v32 = vsel %vm448_vm2, %v444_v54, %v417_v63 }
  0x69   :  { %v454_v28 = vsel %vm448_vm2, %v445_v22, %v424_v25  ;;  %v470_v55 = vsel %vm469_vm3, %v449_v61, %v465_v1 }
  0x6a   :  { %v438_v39 = vadd.f32 %v437_v50, %v436_v37  ;;  %v467_v12 = vrot.slane %v454_v28, 4  ;;  %v471_v21 = vsel %vm469_vm3, %v451_v13, %v466_v59  ;;  %478 = vst [vmem:[%s1122_s3] sm:$0x77] %v470_v55  ;;  %v455_v9 = vsel %vm448_vm2, %v446_v56, %v431_v15 }
  0x6b   :  { %479 = vst [vmem:[%s1122_s3 + $0x8] sm:$0x77] %v471_v21 }
  0x6c   :  { %v456_v46 = vsel %vm448_vm2, %v447_v23, %v438_v39  ;;  %v472_v0 = vsel %vm469_vm3, %v453_v32, %v467_v12 }
  0x6d   :  { %v468_v5 = vrot.slane %v456_v46, 4  ;;  %480 = vst [vmem:[%s1122_s3 + $0x10] sm:$0x77] %v472_v0 }
  0x6f   :  { %v473_v34 = vsel %vm469_vm3, %v455_v9, %v468_v5 }
  0x70   :  { %481 = vst [vmem:[%s1122_s3 + $0x18] sm:$0x77] %v473_v34 }

</bundles_post_ra>
